<compile_context>
chip_gen: v7x
topology: tpu7x:2x2x1
jax: 0.10.0
libtpu: 0.0.40
codegen_flags: <defaults>
</compile_context>

<pallas_src>
import functools

import jax
import jax.numpy as jnp
from jax.experimental import pallas as pl
from jax.experimental.pallas import tpu as pltpu

IP_DIM = 32          # ip_dim
HIDDEN = 100         # HIDDEN_DIM_1 (logical LayerNorm width)
NUM_ACTION = 8       # num_action
HIDDEN_PAD = 128     # lane-dense padded hidden width
ACT_PAD = 128        # lane-dense padded action width

_LEAKY_SLOPE = 0.01  # nn.LeakyReLU default
_LN_EPS = 1e-5       # nn.LayerNorm default
_NEG_BIG = -1e30     # mask value for padded action lanes in log_softmax


def _leaky_relu(x):
    return jnp.where(x > 0, x, _LEAKY_SLOPE * x)


def _padded_layer_norm(h, gamma, beta, n_valid):
    # Padded lanes of `h` are exactly zero, so sums over the padded width equal
    # sums over the logical width. Fused single-pass mean / (biased) variance.
    inv_n = 1.0 / float(n_valid)
    s = jnp.sum(h, axis=-1, keepdims=True)
    ss = jnp.sum(h * h, axis=-1, keepdims=True)
    mu = s * inv_n
    var = jnp.maximum(ss * inv_n - mu * mu, 0.0)
    inv = jax.lax.rsqrt(var + _LN_EPS)
    # gamma/beta are zero on padded lanes -> padded lanes stay exactly zero.
    return (h - mu) * inv * gamma + beta


def actor_kernel(x_ref,
                 w1_ref, b1_ref, g1_ref, be1_ref,
                 w2_ref, b2_ref, g2_ref, be2_ref,
                 wpi_ref, bpi_ref,
                 out_ref):
    x = x_ref[...].astype(jnp.bfloat16)

    # ----- linear1 -> LeakyReLU -> LayerNorm -----
    h = jnp.dot(x, w1_ref[...], preferred_element_type=jnp.float32) + b1_ref[...]
    h = _leaky_relu(h)
    h = _padded_layer_norm(h, g1_ref[...], be1_ref[...], HIDDEN)

    # ----- linear2 -> LeakyReLU -> LayerNorm -----
    h = jnp.dot(h.astype(jnp.bfloat16), w2_ref[...],
                preferred_element_type=jnp.float32) + b2_ref[...]
    h = _leaky_relu(h)
    h = _padded_layer_norm(h, g2_ref[...], be2_ref[...], HIDDEN)

    # ----- pi head -----
    logits = jnp.dot(h.astype(jnp.bfloat16), wpi_ref[...],
                     preferred_element_type=jnp.float32) + bpi_ref[...]

    # ----- log_softmax(dim=-1) over the 8 valid action lanes -----
    lane = jax.lax.broadcasted_iota(jnp.int32, logits.shape, 1)
    masked = jnp.where(lane < NUM_ACTION, logits, _NEG_BIG)
    m = jnp.max(masked, axis=-1, keepdims=True)
    shifted = masked - m
    lse = jnp.log(jnp.sum(jnp.exp(shifted), axis=-1, keepdims=True))
    lgsm = shifted - lse

    # Single lane-dense packed output: [:, :128]=logits, [:, 128:]=log_softmax.
    out_ref[...] = jnp.concatenate([logits, lgsm], axis=-1)


def _replicated_spec(shape):
    nd = len(shape)
    return pl.BlockSpec(shape, lambda i, _nd=nd: (0,) * _nd)


def _round_up(n, m):
    return ((n + m - 1) // m) * m


@functools.partial(jax.jit, static_argnames=("batch_tile",))
def actor_forward(x, packed_params, *, batch_tile=128):
    """x: (B, IP_DIM) f32. packed_params: output of pack_params()."""
    w1, b1, g1, be1, w2, b2, g2, be2, wpi, bpi = packed_params
    B = x.shape[0]
    TB = min(_round_up(batch_tile, 8), _round_up(B, 8))
    Bp = _round_up(B, TB)
    if Bp != B:
        x = jnp.pad(x, ((0, Bp - B), (0, 0)))

    weights = (w1, b1, g1, be1, w2, b2, g2, be2, wpi, bpi)
    out = pl.pallas_call(
        actor_kernel,
        grid=(Bp // TB,),
        in_specs=[pl.BlockSpec((TB, IP_DIM), lambda i: (i, 0))]
                 + [_replicated_spec(a.shape) for a in weights],
        out_specs=pl.BlockSpec((TB, 2 * ACT_PAD), lambda i: (i, 0)),
        out_shape=jax.ShapeDtypeStruct((Bp, 2 * ACT_PAD), jnp.float32),
        compiler_params=pltpu.CompilerParams(
            dimension_semantics=("parallel",)),
    )(x, *weights)

    pi_logit = out[:B, :NUM_ACTION]
    lg_sm = out[:B, ACT_PAD:ACT_PAD + NUM_ACTION]
    return pi_logit, lg_sm


def make_params(key, ip_dim=IP_DIM, hidden=HIDDEN, num_action=NUM_ACTION):
    ks = jax.random.split(key, 3)
    # nn.Linear-style init (uniform +-1/sqrt(fan_in)); weights stored [in, out].
    def lin(k, fan_in, fan_out):
        kw, kb = jax.random.split(k)
        bound = 1.0 / jnp.sqrt(fan_in)
        w = jax.random.uniform(kw, (fan_in, fan_out), jnp.float32, -bound, bound)
        b = jax.random.uniform(kb, (1, fan_out), jnp.float32, -bound, bound)
        return w, b

    w1, b1 = lin(ks[0], ip_dim, hidden)
    w2, b2 = lin(ks[1], hidden, hidden)
    wpi, bpi = lin(ks[2], hidden, num_action)
    # LayerNorm affine params (PyTorch init: weight=1, bias=0).
    g1 = jnp.ones((1, hidden), jnp.float32)
    be1 = jnp.zeros((1, hidden), jnp.float32)
    g2 = jnp.ones((1, hidden), jnp.float32)
    be2 = jnp.zeros((1, hidden), jnp.float32)
    return (w1, b1, g1, be1, w2, b2, g2, be2, wpi, bpi)


def pack_params(params):
    """Zero-pad to lane-dense 128 widths and cast matmul weights to bf16."""
    w1, b1, g1, be1, w2, b2, g2, be2, wpi, bpi = params
    hp = HIDDEN_PAD - HIDDEN
    ap = ACT_PAD - NUM_ACTION

    w1p = jnp.pad(w1, ((0, 0), (0, hp))).astype(jnp.bfloat16)
    b1p = jnp.pad(b1, ((0, 0), (0, hp)))
    g1p = jnp.pad(g1, ((0, 0), (0, hp)))
    be1p = jnp.pad(be1, ((0, 0), (0, hp)))

    w2p = jnp.pad(w2, ((0, hp), (0, hp))).astype(jnp.bfloat16)
    b2p = jnp.pad(b2, ((0, 0), (0, hp)))
    g2p = jnp.pad(g2, ((0, 0), (0, hp)))
    be2p = jnp.pad(be2, ((0, 0), (0, hp)))

    wpip = jnp.pad(wpi, ((0, hp), (0, ap))).astype(jnp.bfloat16)
    bpip = jnp.pad(bpi, ((0, 0), (0, ap)))
    return (w1p, b1p, g1p, be1p, w2p, b2p, g2p, be2p, wpip, bpip)


def reference_forward(x, params):
    # Pure-JAX reference mirroring the PyTorch module (bf16 matmul operands,
    # f32 accumulation / LayerNorm / log_softmax), for sanity checking.
    w1, b1, g1, be1, w2, b2, g2, be2, wpi, bpi = params

    def ln(h, g, b):
        mu = jnp.mean(h, axis=-1, keepdims=True)
        var = jnp.mean((h - mu) ** 2, axis=-1, keepdims=True)
        return (h - mu) * jax.lax.rsqrt(var + _LN_EPS) * g + b

    def bdot(a, w):
        return jnp.dot(a.astype(jnp.bfloat16), w.astype(jnp.bfloat16),
                       preferred_element_type=jnp.float32)

    h = _leaky_relu(bdot(x, w1) + b1)
    h = ln(h, g1, be1)
    h = _leaky_relu(bdot(h, w2) + b2)
    h = ln(h, g2, be2)
    logits = bdot(h, wpi) + bpi
    lgsm = jax.nn.log_softmax(logits, axis=-1)
    return logits, lgsm


if __name__ == "__main__":
    key = jax.random.PRNGKey(0)
    kx, kp = jax.random.split(key)
    BATCH = 48  # not a tile multiple on purpose (exercises batch padding)
    x = jax.random.normal(kx, (BATCH, IP_DIM), jnp.float32)
    params = make_params(kp)
    packed = pack_params(params)

    pi_logit, lg_sm = actor_forward(x, packed, batch_tile=16)  # grid = (3,)
    jax.block_until_ready((pi_logit, lg_sm))

    ref_logit, ref_lgsm = reference_forward(x, params)
    assert pi_logit.shape == (BATCH, NUM_ACTION)
    assert lg_sm.shape == (BATCH, NUM_ACTION)
    assert jnp.allclose(pi_logit, ref_logit, atol=1e-2, rtol=1e-2), (
        float(jnp.max(jnp.abs(pi_logit - ref_logit))))
    assert jnp.allclose(lg_sm, ref_lgsm, atol=1e-2, rtol=1e-2), (
        float(jnp.max(jnp.abs(lg_sm - ref_lgsm))))

    print("KERNEL_OK")
</pallas_src>

<mosaic_0001>
module attributes {stable_mosaic.version = 11 : i64} {
  func.func @actor_kernel(%arg0: i32, %arg1: memref<16x32xf32, #tpu.memory_space<vmem>>, %arg2: memref<32x128xbf16, #tpu.memory_space<vmem>>, %arg3: memref<1x128xf32, #tpu.memory_space<vmem>>, %arg4: memref<1x128xf32, #tpu.memory_space<vmem>>, %arg5: memref<1x128xf32, #tpu.memory_space<vmem>>, %arg6: memref<128x128xbf16, #tpu.memory_space<vmem>>, %arg7: memref<1x128xf32, #tpu.memory_space<vmem>>, %arg8: memref<1x128xf32, #tpu.memory_space<vmem>>, %arg9: memref<1x128xf32, #tpu.memory_space<vmem>>, %arg10: memref<128x128xbf16, #tpu.memory_space<vmem>>, %arg11: memref<1x128xf32, #tpu.memory_space<vmem>>, %arg12: memref<16x256xf32, #tpu.memory_space<vmem>>) attributes {dimension_semantics = [#tpu.dimension_semantics<parallel>], iteration_bounds = array<i64: 3>, scalar_prefetch = 0 : i64, scratch_operands = 0 : i64, tpu.core_type = #tpu.core_type<tc>, window_params = [{transform_indices = @transform_0, window_bounds = array<i64: 16, 32>}, {pipeline_mode = #tpu.pipeline_mode<synchronous>, transform_indices = @transform_1, window_bounds = array<i64: 32, 128>}, {pipeline_mode = #tpu.pipeline_mode<synchronous>, transform_indices = @transform_2, window_bounds = array<i64: 1, 128>}, {pipeline_mode = #tpu.pipeline_mode<synchronous>, transform_indices = @transform_3, window_bounds = array<i64: 1, 128>}, {pipeline_mode = #tpu.pipeline_mode<synchronous>, transform_indices = @transform_4, window_bounds = array<i64: 1, 128>}, {pipeline_mode = #tpu.pipeline_mode<synchronous>, transform_indices = @transform_5, window_bounds = array<i64: 128, 128>}, {pipeline_mode = #tpu.pipeline_mode<synchronous>, transform_indices = @transform_6, window_bounds = array<i64: 1, 128>}, {pipeline_mode = #tpu.pipeline_mode<synchronous>, transform_indices = @transform_7, window_bounds = array<i64: 1, 128>}, {pipeline_mode = #tpu.pipeline_mode<synchronous>, transform_indices = @transform_8, window_bounds = array<i64: 1, 128>}, {pipeline_mode = #tpu.pipeline_mode<synchronous>, transform_indices = @transform_9, window_bounds = array<i64: 128, 128>}, {pipeline_mode = #tpu.pipeline_mode<synchronous>, transform_indices = @transform_10, window_bounds = array<i64: 1, 128>}, {transform_indices = @transform_11, window_bounds = array<i64: 16, 256>}]} {
    %c0 = arith.constant 0 : index
    %c0_0 = arith.constant 0 : index
    %0 = vector.load %arg1[%c0, %c0_0] : memref<16x32xf32, #tpu.memory_space<vmem>>, vector<16x32xf32>
    %1 = arith.truncf %0 : vector<16x32xf32> to vector<16x32xbf16>
    %c0_1 = arith.constant 0 : index
    %c0_2 = arith.constant 0 : index
    %2 = vector.load %arg2[%c0_1, %c0_2] : memref<32x128xbf16, #tpu.memory_space<vmem>>, vector<32x128xbf16>
    %cst = arith.constant dense<0.000000e+00> : vector<16x128xf32>
    %3 = tpu.matmul %1, %2, %cst {dimension_numbers = #tpu.dot_dimension_numbers<[1], [0], [0], [1], [0, 0, 1, 1], [], []>} : vector<16x32xbf16>, vector<32x128xbf16>, vector<16x128xf32> -> vector<16x128xf32>
    %c0_3 = arith.constant 0 : index
    %c0_4 = arith.constant 0 : index
    %4 = vector.load %arg3[%c0_3, %c0_4] : memref<1x128xf32, #tpu.memory_space<vmem>>, vector<1x128xf32>
    %5 = vector.broadcast %4 : vector<1x128xf32> to vector<16x128xf32>
    %6 = arith.addf %3, %5 : vector<16x128xf32>
    %cst_5 = arith.constant 0.000000e+00 : f32
    %7 = vector.broadcast %cst_5 : f32 to vector<16x128xf32>
    %8 = arith.cmpf ogt, %6, %7 : vector<16x128xf32>
    %cst_6 = arith.constant 0.00999999977 : f32
    %9 = vector.broadcast %cst_6 : f32 to vector<16x128xf32>
    %10 = arith.mulf %9, %6 : vector<16x128xf32>
    %11 = arith.select %8, %6, %10 : vector<16x128xi1>, vector<16x128xf32>
    %c0_7 = arith.constant 0 : index
    %c0_8 = arith.constant 0 : index
    %12 = vector.load %arg4[%c0_7, %c0_8] : memref<1x128xf32, #tpu.memory_space<vmem>>, vector<1x128xf32>
    %c0_9 = arith.constant 0 : index
    %c0_10 = arith.constant 0 : index
    %13 = vector.load %arg5[%c0_9, %c0_10] : memref<1x128xf32, #tpu.memory_space<vmem>>, vector<1x128xf32>
    %cst_11 = arith.constant dense<0.000000e+00> : vector<16xf32>
    %14 = vector.multi_reduction <add>, %11, %cst_11 [1] : vector<16x128xf32> to vector<16xf32>
    %15 = vector.shape_cast %14 : vector<16xf32> to vector<16x1xf32>
    %16 = arith.mulf %11, %11 : vector<16x128xf32>
    %cst_12 = arith.constant dense<0.000000e+00> : vector<16xf32>
    %17 = vector.multi_reduction <add>, %16, %cst_12 [1] : vector<16x128xf32> to vector<16xf32>
    %18 = vector.shape_cast %17 : vector<16xf32> to vector<16x1xf32>
    %cst_13 = arith.constant 0.00999999977 : f32
    %19 = vector.broadcast %cst_13 : f32 to vector<16x1xf32>
    %20 = arith.mulf %15, %19 : vector<16x1xf32>
    %cst_14 = arith.constant 0.00999999977 : f32
    %21 = vector.broadcast %cst_14 : f32 to vector<16x1xf32>
    %22 = arith.mulf %18, %21 : vector<16x1xf32>
    %23 = arith.mulf %20, %20 : vector<16x1xf32>
    %24 = arith.subf %22, %23 : vector<16x1xf32>
    %cst_15 = arith.constant 0.000000e+00 : f32
    %25 = vector.broadcast %cst_15 : f32 to vector<16x1xf32>
    %26 = arith.maximumf %24, %25 : vector<16x1xf32>
    %cst_16 = arith.constant 9.99999974E-6 : f32
    %27 = vector.broadcast %cst_16 : f32 to vector<16x1xf32>
    %28 = arith.addf %26, %27 : vector<16x1xf32>
    %29 = math.rsqrt %28 : vector<16x1xf32>
    %30 = vector.broadcast %20 : vector<16x1xf32> to vector<16x128xf32>
    %31 = arith.subf %11, %30 : vector<16x128xf32>
    %32 = vector.broadcast %29 : vector<16x1xf32> to vector<16x128xf32>
    %33 = arith.mulf %31, %32 : vector<16x128xf32>
    %34 = vector.broadcast %12 : vector<1x128xf32> to vector<16x128xf32>
    %35 = arith.mulf %33, %34 : vector<16x128xf32>
    %36 = vector.broadcast %13 : vector<1x128xf32> to vector<16x128xf32>
    %37 = arith.addf %35, %36 : vector<16x128xf32>
    %38 = arith.truncf %37 : vector<16x128xf32> to vector<16x128xbf16>
    %c0_17 = arith.constant 0 : index
    %c0_18 = arith.constant 0 : index
    %39 = vector.load %arg6[%c0_17, %c0_18] : memref<128x128xbf16, #tpu.memory_space<vmem>>, vector<128x128xbf16>
    %cst_19 = arith.constant dense<0.000000e+00> : vector<16x128xf32>
    %40 = tpu.matmul %38, %39, %cst_19 {dimension_numbers = #tpu.dot_dimension_numbers<[1], [0], [0], [1], [0, 0, 1, 1], [], []>} : vector<16x128xbf16>, vector<128x128xbf16>, vector<16x128xf32> -> vector<16x128xf32>
    %c0_20 = arith.constant 0 : index
    %c0_21 = arith.constant 0 : index
    %41 = vector.load %arg7[%c0_20, %c0_21] : memref<1x128xf32, #tpu.memory_space<vmem>>, vector<1x128xf32>
    %42 = vector.broadcast %41 : vector<1x128xf32> to vector<16x128xf32>
    %43 = arith.addf %40, %42 : vector<16x128xf32>
    %cst_22 = arith.constant 0.000000e+00 : f32
    %44 = vector.broadcast %cst_22 : f32 to vector<16x128xf32>
    %45 = arith.cmpf ogt, %43, %44 : vector<16x128xf32>
    %cst_23 = arith.constant 0.00999999977 : f32
    %46 = vector.broadcast %cst_23 : f32 to vector<16x128xf32>
    %47 = arith.mulf %46, %43 : vector<16x128xf32>
    %48 = arith.select %45, %43, %47 : vector<16x128xi1>, vector<16x128xf32>
    %c0_24 = arith.constant 0 : index
    %c0_25 = arith.constant 0 : index
    %49 = vector.load %arg8[%c0_24, %c0_25] : memref<1x128xf32, #tpu.memory_space<vmem>>, vector<1x128xf32>
    %c0_26 = arith.constant 0 : index
    %c0_27 = arith.constant 0 : index
    %50 = vector.load %arg9[%c0_26, %c0_27] : memref<1x128xf32, #tpu.memory_space<vmem>>, vector<1x128xf32>
    %cst_28 = arith.constant dense<0.000000e+00> : vector<16xf32>
    %51 = vector.multi_reduction <add>, %48, %cst_28 [1] : vector<16x128xf32> to vector<16xf32>
    %52 = vector.shape_cast %51 : vector<16xf32> to vector<16x1xf32>
    %53 = arith.mulf %48, %48 : vector<16x128xf32>
    %cst_29 = arith.constant dense<0.000000e+00> : vector<16xf32>
    %54 = vector.multi_reduction <add>, %53, %cst_29 [1] : vector<16x128xf32> to vector<16xf32>
    %55 = vector.shape_cast %54 : vector<16xf32> to vector<16x1xf32>
    %cst_30 = arith.constant 0.00999999977 : f32
    %56 = vector.broadcast %cst_30 : f32 to vector<16x1xf32>
    %57 = arith.mulf %52, %56 : vector<16x1xf32>
    %cst_31 = arith.constant 0.00999999977 : f32
    %58 = vector.broadcast %cst_31 : f32 to vector<16x1xf32>
    %59 = arith.mulf %55, %58 : vector<16x1xf32>
    %60 = arith.mulf %57, %57 : vector<16x1xf32>
    %61 = arith.subf %59, %60 : vector<16x1xf32>
    %cst_32 = arith.constant 0.000000e+00 : f32
    %62 = vector.broadcast %cst_32 : f32 to vector<16x1xf32>
    %63 = arith.maximumf %61, %62 : vector<16x1xf32>
    %cst_33 = arith.constant 9.99999974E-6 : f32
    %64 = vector.broadcast %cst_33 : f32 to vector<16x1xf32>
    %65 = arith.addf %63, %64 : vector<16x1xf32>
    %66 = math.rsqrt %65 : vector<16x1xf32>
    %67 = vector.broadcast %57 : vector<16x1xf32> to vector<16x128xf32>
    %68 = arith.subf %48, %67 : vector<16x128xf32>
    %69 = vector.broadcast %66 : vector<16x1xf32> to vector<16x128xf32>
    %70 = arith.mulf %68, %69 : vector<16x128xf32>
    %71 = vector.broadcast %49 : vector<1x128xf32> to vector<16x128xf32>
    %72 = arith.mulf %70, %71 : vector<16x128xf32>
    %73 = vector.broadcast %50 : vector<1x128xf32> to vector<16x128xf32>
    %74 = arith.addf %72, %73 : vector<16x128xf32>
    %75 = arith.truncf %74 : vector<16x128xf32> to vector<16x128xbf16>
    %c0_34 = arith.constant 0 : index
    %c0_35 = arith.constant 0 : index
    %76 = vector.load %arg10[%c0_34, %c0_35] : memref<128x128xbf16, #tpu.memory_space<vmem>>, vector<128x128xbf16>
    %cst_36 = arith.constant dense<0.000000e+00> : vector<16x128xf32>
    %77 = tpu.matmul %75, %76, %cst_36 {dimension_numbers = #tpu.dot_dimension_numbers<[1], [0], [0], [1], [0, 0, 1, 1], [], []>} : vector<16x128xbf16>, vector<128x128xbf16>, vector<16x128xf32> -> vector<16x128xf32>
    %c0_37 = arith.constant 0 : index
    %c0_38 = arith.constant 0 : index
    %78 = vector.load %arg11[%c0_37, %c0_38] : memref<1x128xf32, #tpu.memory_space<vmem>>, vector<1x128xf32>
    %79 = vector.broadcast %78 : vector<1x128xf32> to vector<16x128xf32>
    %80 = arith.addf %77, %79 : vector<16x128xf32>
    %81 = tpu.iota {dimensions = array<i32: 1>} : vector<16x128xi32>
    %c8_i32 = arith.constant 8 : i32
    %82 = vector.broadcast %c8_i32 : i32 to vector<16x128xi32>
    %83 = arith.cmpi slt, %81, %82 : vector<16x128xi32>
    %cst_39 = arith.constant -1.000000e+30 : f32
    %84 = vector.broadcast %cst_39 : f32 to vector<16x128xf32>
    %85 = arith.select %83, %80, %84 : vector<16x128xi1>, vector<16x128xf32>
    %cst_40 = arith.constant dense<0xFF800000> : vector<16xf32>
    %86 = vector.multi_reduction <maximumf>, %85, %cst_40 [1] : vector<16x128xf32> to vector<16xf32>
    %87 = vector.shape_cast %86 : vector<16xf32> to vector<16x1xf32>
    %88 = vector.broadcast %87 : vector<16x1xf32> to vector<16x128xf32>
    %89 = arith.subf %85, %88 : vector<16x128xf32>
    %90 = math.exp %89 : vector<16x128xf32>
    %cst_41 = arith.constant dense<0.000000e+00> : vector<16xf32>
    %91 = vector.multi_reduction <add>, %90, %cst_41 [1] : vector<16x128xf32> to vector<16xf32>
    %92 = vector.shape_cast %91 : vector<16xf32> to vector<16x1xf32>
    %93 = math.log %92 : vector<16x1xf32>
    %94 = vector.broadcast %93 : vector<16x1xf32> to vector<16x128xf32>
    %95 = arith.subf %89, %94 : vector<16x128xf32>
    %96 = tpu.concatenate %80, %95 in 1 : vector<16x128xf32>, vector<16x128xf32> -> vector<16x256xf32>
    %c0_42 = arith.constant 0 : index
    %c0_43 = arith.constant 0 : index
    %97 = vector.load %arg12[%c0_42, %c0_43] : memref<16x256xf32, #tpu.memory_space<vmem>>, vector<16x256xf32>
    tpu.vector_store %arg12[%c0_42, %c0_43], %96 {strides = array<i32>} : memref<16x256xf32, #tpu.memory_space<vmem>>, vector<16x256xf32>,
    return
  }
  func.func @transform_0(%arg0: i32) -> (i32, i32) {
    %c0_i32 = arith.constant 0 : i32
    %c0_i32_0 = arith.constant 0 : i32
    return %arg0, %c0_i32 : i32, i32
  }
  func.func @transform_1(%arg0: i32) -> (i32, i32) {
    %c0_i32 = arith.constant 0 : i32
    %c0_i32_0 = arith.constant 0 : i32
    %c0_i32_1 = arith.constant 0 : i32
    return %c0_i32, %c0_i32_0 : i32, i32
  }
  func.func @transform_2(%arg0: i32) -> (i32, i32) {
    %c0_i32 = arith.constant 0 : i32
    %c0_i32_0 = arith.constant 0 : i32
    %c0_i32_1 = arith.constant 0 : i32
    return %c0_i32, %c0_i32_0 : i32, i32
  }
  func.func @transform_3(%arg0: i32) -> (i32, i32) {
    %c0_i32 = arith.constant 0 : i32
    %c0_i32_0 = arith.constant 0 : i32
    %c0_i32_1 = arith.constant 0 : i32
    return %c0_i32, %c0_i32_0 : i32, i32
  }
  func.func @transform_4(%arg0: i32) -> (i32, i32) {
    %c0_i32 = arith.constant 0 : i32
    %c0_i32_0 = arith.constant 0 : i32
    %c0_i32_1 = arith.constant 0 : i32
    return %c0_i32, %c0_i32_0 : i32, i32
  }
  func.func @transform_5(%arg0: i32) -> (i32, i32) {
    %c0_i32 = arith.constant 0 : i32
    %c0_i32_0 = arith.constant 0 : i32
    %c0_i32_1 = arith.constant 0 : i32
    return %c0_i32, %c0_i32_0 : i32, i32
  }
  func.func @transform_6(%arg0: i32) -> (i32, i32) {
    %c0_i32 = arith.constant 0 : i32
    %c0_i32_0 = arith.constant 0 : i32
    %c0_i32_1 = arith.constant 0 : i32
    return %c0_i32, %c0_i32_0 : i32, i32
  }
  func.func @transform_7(%arg0: i32) -> (i32, i32) {
    %c0_i32 = arith.constant 0 : i32
    %c0_i32_0 = arith.constant 0 : i32
    %c0_i32_1 = arith.constant 0 : i32
    return %c0_i32, %c0_i32_0 : i32, i32
  }
  func.func @transform_8(%arg0: i32) -> (i32, i32) {
    %c0_i32 = arith.constant 0 : i32
    %c0_i32_0 = arith.constant 0 : i32
    %c0_i32_1 = arith.constant 0 : i32
    return %c0_i32, %c0_i32_0 : i32, i32
  }
  func.func @transform_9(%arg0: i32) -> (i32, i32) {
    %c0_i32 = arith.constant 0 : i32
    %c0_i32_0 = arith.constant 0 : i32
    %c0_i32_1 = arith.constant 0 : i32
    return %c0_i32, %c0_i32_0 : i32, i32
  }
  func.func @transform_10(%arg0: i32) -> (i32, i32) {
    %c0_i32 = arith.constant 0 : i32
    %c0_i32_0 = arith.constant 0 : i32
    %c0_i32_1 = arith.constant 0 : i32
    return %c0_i32, %c0_i32_0 : i32, i32
  }
  func.func @transform_11(%arg0: i32) -> (i32, i32) {
    %c0_i32 = arith.constant 0 : i32
    %c0_i32_0 = arith.constant 0 : i32
    return %arg0, %c0_i32 : i32, i32
  }
}

</mosaic_0001>

<bundles_post_ra>
// kernel: actor_forward.1
= control target key start
LH: loop header
LB: loop body
LE: loop exit
PB: predicated region body
PF: predicated region fallthrough
CT: control target
= control target key end

     0   :  { %16 = vsyncpa [#allocation3], 0  ;;  %s1180_s17 = smov 0   ;;  %s1324_s0 = inlined_call_operand.vmem [shape: f32[48,32], index: 0, kind: input, shape index: {}]   ;;  %s1325_s1 = inlined_call_operand.vmem [shape: bf16[32,128], index: 1, kind: input, shape index: {}]   ;;  %s1326_s2 = inlined_call_operand.vmem [shape: f32[1,128], index: 2, kind: input, shape index: {}]   ;;  %s1327_s3 = inlined_call_operand.vmem [shape: f32[1,128], index: 3, kind: input, shape index: {}]   ;;  %s1328_s4 = inlined_call_operand.vmem [shape: f32[1,128], index: 4, kind: input, shape index: {}]   ;;  %s1329_s5 = inlined_call_operand.vmem [shape: bf16[128,128], index: 5, kind: input, shape index: {}]   ;;  %s1330_s6 = inlined_call_operand.vmem [shape: f32[1,128], index: 6, kind: input, shape index: {}]   ;;  %s1331_s7 = inlined_call_operand.vmem [shape: f32[1,128], index: 7, kind: input, shape index: {}]   ;;  %s1332_s8 = inlined_call_operand.vmem [shape: f32[1,128], index: 8, kind: input, shape index: {}]   ;;  %s1333_s9 = inlined_call_operand.hbm [shape: bf16[128,128], index: 9, kind: input, shape index: {}]   ;;  %s1334_s10 = inlined_call_operand.vmem [shape: f32[1,128], index: 10, kind: input, shape index: {}]   ;;  %s1335_s11 = inlined_call_operand.vmem [shape: f32[48,256], index: 11, kind: output, shape index: {}]  }
   0x1 LB: > { %s908_s18 = sadd.s32 4294967295, %s1113_s17   ;;  %p910_p0 = scmp.ge.s32.totalorder %s1113_s17, 1  ;;  %s1113_s17 = sphi %s1180_s17, %s22_s17  }
   0x2   : > { %p289_p1 = scmp.lt.s32.totalorder %s1113_s17, 4  ;;  %s1115_s19 = smov [#allocation2]  }
   0x3   : > { %s325_s20 = sshll.u32 %s1115_s19, 4  ;;  %p1194_p3 = scmp.eq.s32.totalorder %s908_s18, 0  ;;  %s326_s20 = int_to_ptr.vmem [resolvable:$true] %s325_s20 }
   0x4   : > { %p1188_p2 = pnand %p910_p0, %p289_p1  ;;  %s1075_s26 = scalar_lea.hbm %s1333_s9, 1024 }
   0x5   : > { %s1340_s22 = scalar_select %p1194_p3, 1, 0 }
   0x6   : > { %s1339_s21 = scalar_select %p1188_p2, 1, 0 }
   0x7   : > { %p1022_p4 = pneg %p1188_p2  ;;  %p1076_p6 = scmp.ne.s32.totalorder %s1333_s9, %s1075_s26 }
   0x8   : > { %p1082_p10 = scmp.lt.u32.totalorder %s1075_s26, %s1333_s9 }
   0x9   : > { %p1202_p5 = pnand %p1194_p3, %p1022_p4 }
   0xb   : > { %p1077_p7 = pneg %p1202_p5 }
   0xd   : > { %p1078_p8 = pnand %p1077_p7, %p1076_p6 }
   0xf   : > { %p1079_p9 = pneg %p1078_p8 }
  0x11   : > { %p1084_p11 = pnand %p1082_p10, %p1079_p9 }
  0x13   : > { %1087 = shalt.err (!%p1084_p11)
}
  0x14   : > { %s1088_s12 = scalar_lea.vmem %s326_s20, 1024  ;;  %p1096_p1 = scmp.lt.s32.totalorder %s326_s20, %s326_s20 }
  0x15   : > { %p1089_p12 = scmp.ne.s32.totalorder %s326_s20, %s1088_s12  ;;  %p1097_p4 = scmp.lt.s32.totalorder %s1088_s12, %s1088_s12 }
  0x17   : > { %p1091_p13 = pnand %p1089_p12, %p1077_p7  ;;  %p1098_p3 = por %p1097_p4, %p1096_p1 }
  0x19   : > { %p1092_p0 = pneg %p1091_p13 }
  0x1b   : > { %p1099_p2 = pnand %p1098_p3, %p1092_p0 }
  0x1d   : > { %1102 = shalt.err (!%p1099_p2)
}
  0x1e   : > { %s1116_s13 = smov 64   ;;  %s1117_s14 = smov 4  }
  0x1f   : > { %1025 = dma.hbm_to_vmem [thread:$0]  (!%p1202_p5), %s1333_s9, 1024, %s326_s20, [#allocation3], %s1116_s13, %s1116_s13, %s1117_s14  }
  0x20   : > { %p1342_p6 = scmp.ne.s32.totalorder %s1339_s21, 0 }
  0x21   : > { %p1343_p8 = scmp.ne.s32.totalorder (!%p1342_p6), %s1340_s22, 0 }
  0x22   : > { %353 = sbr.rel (%p1342_p6) target bundleno = 1368 (0x558), region = 64 }
  0x29   : > { %1108 = dma.done.wait (%p1343_p8), [#allocation3], 1024  }
  0x2a   : > { %1110 = vsyncadd (%p1343_p8), [#allocation3], 4294966272  ;;  %s915_s19 = sshll.u32 %s908_s18, 1  ;;  %v1118_v0 = vmov 0.0   ;;  %vm1119_vm0 = vmmov 0   ;;  %v1041_v1 = vld [vmem:[%s1325_s1] sm:$0xff]  }
  0x2b   : > { %970 = vmatprep.subr.bf16.mxu0 %v1118_v0  ;;  %974 = vmatprep.mubr.msk.bf16.mxu0 %vm1119_vm0, %v1118_v0  ;;  %p395_p2 = scmp.lt.s32.totalorder %s915_s19, 5  ;;  %v1042_v2 = vld [vmem:[%s1325_s1 + $0x8] sm:$0xff]   ;;  %vm434_vm1 = vcmask 261120   ;;  %v920_v6 = vld [vmem:[%s1326_s2] ss:$0 sm:$0xff]  ;;  %v1045_v21 = vld [vmem:[%s1329_s5 + $0x10] sm:$0xff]  }
  0x2c   : > { %978 = vmatprep.subr.bf16.mxu1 %v1118_v0  ;;  %994 = vmatprep.mubr.msk.bf16.mxu1 %vm1119_vm0, %v1118_v0  ;;  %v1043_v19 = vld [vmem:[%s1329_s5] sm:$0xff]   ;;  %v1044_v20 = vld [vmem:[%s1329_s5 + $0x8] sm:$0xff]   ;;  %v1046_v22 = vld [vmem:[%s1329_s5 + $0x18] sm:$0xff]  }
  0x2d   : > { %s1345_s19 = smov (!%p395_p2, %s915_s19), 5  ;;  %971 = vmatpush3.bf16.msra.mxu0 %v1041_v1  ;;  %979 = vmatpush3.bf16.msra.mxu1 %v1043_v19  ;;  %v1047_v23 = vld [vmem:[%s1329_s5 + $0x20] sm:$0xff]   ;;  %v1048_v24 = vld [vmem:[%s1329_s5 + $0x28] sm:$0xff]   ;;  %v1049_v25 = vld [vmem:[%s1329_s5 + $0x30] sm:$0xff]  }
  0x2e   : > { %s916_s20 = sshll.u32 %s1345_s19, 3  ;;  %972 = vmatprep.subr.bf16.mxu0 %v1118_v0  ;;  %980 = vmatprep.subr.bf16.mxu1 %v1118_v0  ;;  %v1050_v26 = vld [vmem:[%s1329_s5 + $0x38] sm:$0xff]   ;;  %v924_v46 = vld [vmem:[%s1327_s3] ss:$0 sm:$0xff]  ;;  %s948_s22 = sshll.u32 %s1345_s19, 4 }
  0x2f   : > { %s398_s18 = scalar_lea.vmem %s1324_s0, %s916_s20  ;;  %v925_v51 = vld [vmem:[%s1328_s4] ss:$0 sm:$0xff]  ;;  %s1315_s26 = scalar_lea.vmem %s1335_s11, %s948_s22 }
  0x30   : > { %v408_v3 = vld [vmem:[%s398_s18] sm:$0xff]  ;;  %v409_v4 = vld [vmem:[%s398_s18 + $0x8] sm:$0xff] }
  0x31   : > { %v410_v5 = vpack.c.bf16 %v409_v4, %v408_v3  ;;  %973 = vmatpush3.bf16.msra.mxu0 %v1042_v2  ;;  %981 = vmatpush3.bf16.msra.mxu1 %v1044_v20  ;;  %v926_v56 = vld [vmem:[%s1330_s6] ss:$0 sm:$0xff] }
  0x32   : > { %998 = vmatprep.subr.bf16.mxu0 %v1118_v0  ;;  %982 = vmatprep.subr.bf16.mxu1 %v1118_v0 }
  0x34   : > { %975 = vmatmul.mubr.msk.bf16.vlgmr.msra.gmra.mrb[0].mxu0 %vm434_vm1, %v410_v5 }
  0x35   : > { %1014 = vmatprep.mubr.msk.bf16.mxu0 %vm1119_vm0, %v1118_v0  ;;  %983 = vmatpush3.bf16.msra.mxu1 %v1045_v21 }
  0x36   : > { %984 = vmatprep.subr.bf16.mxu1 %v1118_v0 }
  0x39   : > { %985 = vmatpush3.bf16.msra.mxu1 %v1046_v22 }
  0x3a   : > { %986 = vmatprep.subr.bf16.mxu1 %v1118_v0 }
  0x3d   : > { %987 = vmatpush3.bf16.msra.mxu1 %v1047_v23 }
  0x3e   : > { %988 = vmatprep.subr.bf16.mxu1 %v1118_v0 }
  0x41   : > { %989 = vmatpush3.bf16.msra.mxu1 %v1048_v24 }
  0x42   : > { %990 = vmatprep.subr.bf16.mxu1 %v1118_v0 }
  0x45   : > { %991 = vmatpush3.bf16.msra.mxu1 %v1049_v25 }
  0x46   : > { %992 = vmatprep.subr.bf16.mxu1 %v1118_v0 }
  0x49   : > { %993 = vmatpush3.bf16.msra.mxu1 %v1050_v26 }
 0x107   : > { %v472_v7 = vpop.f32.mrb[0].mxu0 }
 0x108   : > { %v473_v8 = vadd.f32 %v920_v6, %v472_v7  ;;  %v976_v9 = vpop.f32.mrb[1].mxu0  ;;  %v1052_v7 = vld [vmem:[#allocation2 + $0x8] sm:$0xff]  }
 0x109   : > { %v475_v10 = vpop.f32.mrb[2].mxu0  ;;  %v1054_v9 = vld [vmem:[#allocation2 + $0x18] sm:$0xff]  }
 0x10a   : > { %v481_v11 = vmul.f32 0.01, %v473_v8  ;;  %v476_v12 = vadd.f32 %v920_v6, %v475_v10  ;;  %v977_v13 = vpop.f32.mrb[3].mxu0  ;;  %vm479_vm2 = vcmp.gt.f32.partialorder %v473_v8, 0.0  ;;  %v1051_v6 = vld [vmem:[#allocation2] sm:$0xff]  }
 0x10b   : > { %999 = vmatpush3.bf16.msra.mxu0 %v1051_v6  ;;  %v1055_v10 = vld [vmem:[#allocation2 + $0x20] sm:$0xff]   ;;  %v1058_v13 = vld [vmem:[#allocation2 + $0x38] sm:$0xff]  }
 0x10c   : > { %v482_v14 = vmul.f32 0.01, %v476_v12  ;;  %v483_v15 = vsel %vm479_vm2, %v473_v8, %v481_v11  ;;  %vm480_vm3 = vcmp.gt.f32.partialorder %v476_v12, 0.0  ;;  %1000 = vmatprep.subr.bf16.mxu0 %v1118_v0  ;;  %v1053_v8 = vld [vmem:[#allocation2 + $0x10] sm:$0xff]   ;;  %v1056_v11 = vld [vmem:[#allocation2 + $0x28] sm:$0xff]  }
 0x10d   : > { %487 = vadd.xlane.f32.xlu0 %v483_v15  ;;  %v491_v16 = vmul.f32 %v483_v15, %v483_v15 }
 0x10e   : > { %v484_v17 = vsel %vm480_vm3, %v476_v12, %v482_v14  ;;  %v1057_v12 = vld [vmem:[#allocation2 + $0x30] sm:$0xff]  }
 0x10f   : > { %493 = vadd.xlane.f32.xlu1 %v491_v16  ;;  %v492_v18 = vmul.f32 %v484_v17, %v484_v17  ;;  %1001 = vmatpush3.bf16.msra.mxu0 %v1052_v7 }
 0x110   : > { %1002 = vmatprep.subr.bf16.mxu0 %v1118_v0 }
 0x111   : > { %489 = vadd.xlane.f32.xlu0 %v484_v17 }
 0x113   : > { %495 = vadd.xlane.f32.xlu1 %v492_v18  ;;  %1003 = vmatpush3.bf16.msra.mxu0 %v1053_v8 }
 0x114   : > { %1004 = vmatprep.subr.bf16.mxu0 %v1118_v0 }
 0x117   : > { %1005 = vmatpush3.bf16.msra.mxu0 %v1054_v9 }
 0x118   : > { %1006 = vmatprep.subr.bf16.mxu0 %v1118_v0 }
 0x11b   : > { %1007 = vmatpush3.bf16.msra.mxu0 %v1055_v10 }
 0x11c   : > { %1008 = vmatprep.subr.bf16.mxu0 %v1118_v0 }
 0x11f   : > { %1009 = vmatpush3.bf16.msra.mxu0 %v1056_v11 }
 0x120   : > { %1010 = vmatprep.subr.bf16.mxu0 %v1118_v0 }
 0x123   : > { %1011 = vmatpush3.bf16.msra.mxu0 %v1057_v12 }
 0x124   : > { %1012 = vmatprep.subr.bf16.mxu0 %v1118_v0 }
 0x127   : > { %1013 = vmatpush3.bf16.msra.mxu0 %v1058_v13 }
 0x19a   : > { %v488_v27 = vpop.xlane.xlu0 %487 }
 0x19b   : > { %v497_v28 = vmul.f32 0.01, %v488_v27 }
 0x19c   : > { %v494_v29 = vpop.xlane.xlu1 %493 }
 0x19d   : > { %v501_v30 = vmul.f32 %v497_v28, %v497_v28  ;;  %v499_v31 = vmul.f32 0.01, %v494_v29  ;;  %v511_v43 = vsub.f32 %v483_v15, %v497_v28 }
 0x19e   : > { %v490_v32 = vpop.xlane.xlu0 %489 }
 0x19f   : > { %v503_v33 = vsub.f32 %v499_v31, %v501_v30  ;;  %v498_v34 = vmul.f32 0.01, %v490_v32  ;;  %v935_v31 = vld [vmem:[%s1331_s7] ss:$0 sm:$0xff] }
 0x1a0   : > { %v496_v35 = vpop.xlane.xlu1 %495 }
 0x1a1   : > { %v505_v36 = vmax.f32 %v503_v33, 0.0  ;;  %v502_v37 = vmul.f32 %v498_v34, %v498_v34  ;;  %v500_v38 = vmul.f32 0.01, %v496_v35  ;;  %v512_v47 = vsub.f32 %v484_v17, %v498_v34 }
 0x1a3   : > { %v507_v39 = vadd.f32 1e-05, %v505_v36  ;;  %v504_v40 = vsub.f32 %v500_v38, %v502_v37  ;;  %v936_v37 = vld [vmem:[%s1332_s8] ss:$0 sm:$0xff] }
 0x1a5   : > { %1059 = vrsqrt.f32 %v507_v39  ;;  %v506_v41 = vmax.f32 %v504_v40, 0.0 }
 0x1a7   : > { %v508_v42 = vadd.f32 1e-05, %v506_v41 }
 0x1a9   : > { %1061 = vrsqrt.f32 %v508_v42  ;;  %v809_v42 = vlaneseq }
 0x1af   : > { %v1060_v44 = vpop.eup %1059 }
 0x1b0   : > { %v513_v45 = vmul.f32 %v1060_v44, %v511_v43  ;;  %v810_v43 = vand.u32 127, %v809_v42  ;;  %v937_v44 = vld [vmem:[%s1334_s10] ss:$0 sm:$0xff] }
 0x1b2   : > { %v521_v50 = vmul.f32 %v924_v46, %v513_v45  ;;  %vm811_vm6 = vcmp.lt.s32.totalorder %v810_v43, 8 }
 0x1b3   : > { %v1062_v48 = vpop.eup %1061 }
 0x1b4   : > { %v514_v49 = vmul.f32 %v1062_v48, %v512_v47  ;;  %v529_v53 = vadd.f32 %v925_v51, %v521_v50 }
 0x1b6   : > { %v522_v52 = vmul.f32 %v924_v46, %v514_v49 }
 0x1b8   : > { %v530_v54 = vadd.f32 %v925_v51, %v522_v52 }
 0x1ba   : > { %v531_v55 = vpack.c.bf16 %v530_v54, %v529_v53 }
 0x1bc   : > { %995 = vmatmul.mubr.bf16.vlgmr.msra.gmra.mrb[0].mxu1 %v531_v55 }
 0x28f   : > { %v637_v57 = vpop.f32.mrb[0].mxu1 }
 0x290   : > { %v638_v58 = vadd.f32 %v926_v56, %v637_v57  ;;  %v996_v59 = vpop.f32.mrb[1].mxu1 }
 0x291   : > { %v640_v60 = vpop.f32.mrb[2].mxu1 }
 0x292   : > { %v646_v61 = vmul.f32 0.01, %v638_v58  ;;  %v641_v62 = vadd.f32 %v926_v56, %v640_v60  ;;  %v997_v63 = vpop.f32.mrb[3].mxu1  ;;  %vm644_vm4 = vcmp.gt.f32.partialorder %v638_v58, 0.0 }
 0x294   : > { %v647_v1 = vmul.f32 0.01, %v641_v62  ;;  %v648_v2 = vsel %vm644_vm4, %v638_v58, %v646_v61  ;;  %vm645_vm5 = vcmp.gt.f32.partialorder %v641_v62, 0.0 }
 0x295   : > { %652 = vadd.xlane.f32.xlu0 %v648_v2  ;;  %v656_v4 = vmul.f32 %v648_v2, %v648_v2 }
 0x296   : > { %v649_v3 = vsel %vm645_vm5, %v641_v62, %v647_v1 }
 0x297   : > { %654 = vadd.xlane.f32.xlu1 %v649_v3  ;;  %v657_v5 = vmul.f32 %v649_v3, %v649_v3 }
 0x299   : > { %658 = vadd.xlane.f32.xlu0 %v656_v4 }
 0x29b   : > { %660 = vadd.xlane.f32.xlu1 %v657_v5 }
 0x322   : > { %v653_v14 = vpop.xlane.xlu0 %652 }
 0x323   : > { %v662_v15 = vmul.f32 0.01, %v653_v14 }
 0x324   : > { %v655_v16 = vpop.xlane.xlu1 %654 }
 0x325   : > { %v663_v17 = vmul.f32 0.01, %v655_v16  ;;  %v666_v19 = vmul.f32 %v662_v15, %v662_v15  ;;  %v676_v0 = vsub.f32 %v648_v2, %v662_v15 }
 0x326   : > { %v659_v18 = vpop.xlane.xlu0 %658 }
 0x327   : > { %v664_v20 = vmul.f32 0.01, %v659_v18  ;;  %v667_v22 = vmul.f32 %v663_v17, %v663_v17  ;;  %v677_v32 = vsub.f32 %v649_v3, %v663_v17 }
 0x328   : > { %v661_v21 = vpop.xlane.xlu1 %660 }
 0x329   : > { %v668_v23 = vsub.f32 %v664_v20, %v666_v19  ;;  %v665_v24 = vmul.f32 0.01, %v661_v21 }
 0x32b   : > { %v670_v25 = vmax.f32 %v668_v23, 0.0  ;;  %v669_v26 = vsub.f32 %v665_v24, %v667_v22 }
 0x32d   : > { %v672_v27 = vadd.f32 1e-05, %v670_v25  ;;  %v671_v28 = vmax.f32 %v669_v26, 0.0 }
 0x32f   : > { %1063 = vrsqrt.f32 %v672_v27  ;;  %v673_v29 = vadd.f32 1e-05, %v671_v28 }
 0x331   : > { %1065 = vrsqrt.f32 %v673_v29 }
 0x339   : > { %v1064_v30 = vpop.eup %1063 }
 0x33a   : > { %v678_v33 = vmul.f32 %v1064_v30, %v676_v0 }
 0x33b   : > { %v1066_v34 = vpop.eup %1065 }
 0x33c   : > { %v679_v35 = vmul.f32 %v1066_v34, %v677_v32  ;;  %v686_v36 = vmul.f32 %v935_v31, %v678_v33 }
 0x33e   : > { %v687_v38 = vmul.f32 %v935_v31, %v679_v35  ;;  %v694_v39 = vadd.f32 %v936_v37, %v686_v36 }
 0x340   : > { %v695_v40 = vadd.f32 %v936_v37, %v687_v38 }
 0x342   : > { %v696_v41 = vpack.c.bf16 %v695_v40, %v694_v39 }
 0x344   : > { %1015 = vmatmul.mubr.bf16.vlgmr.msra.gmra.mrb[4].mxu0 %v696_v41 }
 0x417   : > { %v802_v45 = vpop.f32.mrb[4].mxu0 }
 0x418   : > { %v803_v46 = vadd.f32 %v937_v44, %v802_v45  ;;  %v1016_v47 = vpop.f32.mrb[5].mxu0 }
 0x419   : > { %v805_v48 = vpop.f32.mrb[6].mxu0 }
 0x41a   : > { %834 = vst [vmem:[%s1315_s26] sm:$0xff] %v803_v46  ;;  %v806_v49 = vadd.f32 %v937_v44, %v805_v48  ;;  %v1017_v50 = vpop.f32.mrb[7].mxu0  ;;  %v812_v51 = vsel %vm811_vm6, %v803_v46, -1e+30 }
 0x41b   : > { %814 = vmax.xlane.f32.xlu0 %v812_v51 }
 0x41c   : > { %836 = vst [vmem:[%s1315_s26 + $0x10] sm:$0xff] %v806_v49  ;;  %v813_v52 = vsel %vm811_vm6, %v806_v49, -1e+30 }
 0x41d   : > { %816 = vmax.xlane.f32.xlu1 %v813_v52 }
 0x4a8   : > { %v815_v53 = vpop.xlane.xlu0 %814 }
 0x4a9   : > { %v818_v54 = vsub.f32 %v812_v51, %v815_v53 }
 0x4aa   : > { %v817_v55 = vpop.xlane.xlu1 %816 }
 0x4ab   : > { %v820_v56 = vmul.f32 1.442695, %v818_v54  ;;  %v819_v57 = vsub.f32 %v813_v52, %v817_v55 }
 0x4ad   : > { %1067 = vpow2.f32 %v820_v56  ;;  %v822_v58 = vmul.f32 1.442695, %v819_v57 }
 0x4af   : > { %1069 = vpow2.f32 %v822_v58 }
 0x4b7   : > { %v1068_v59 = vpop.eup %1067 }
 0x4b8   : > { %824 = vadd.xlane.f32.xlu0 %v1068_v59 }
 0x4b9   : > { %v1070_v60 = vpop.eup %1069 }
 0x4ba   : > { %826 = vadd.xlane.f32.xlu1 %v1070_v60 }
 0x545   : > { %v825_v61 = vpop.xlane.xlu0 %824 }
 0x546   : > { %1071 = vlog2.f32 %v825_v61 }
 0x547   : > { %v827_v62 = vpop.xlane.xlu1 %826 }
 0x548   : > { %1073 = vlog2.f32 %v827_v62 }
 0x550   : > { %v1072_v63 = vpop.eup %1071 }
 0x551   : > { %v829_v1 = vmul.f32 0.6931472, %v1072_v63 }
 0x552   : > { %v1074_v2 = vpop.eup %1073 }
 0x553   : > { %v832_v3 = vsub.f32 %v818_v54, %v829_v1  ;;  %v831_v4 = vmul.f32 0.6931472, %v1074_v2 }
 0x555   : > { %835 = vst [vmem:[%s1315_s26 + $0x8] sm:$0xff] %v832_v3  ;;  %v833_v5 = vsub.f32 %v819_v57, %v831_v4 }
 0x557   : > { %837 = vst [vmem:[%s1315_s26 + $0x18] sm:$0xff] %v833_v5 }
 0x558 PF: > { %s22_s17 = sadd.s32 1, %s1113_s17  }
 0x559   : > { %p19_p3 = scmp.ge.s32.totalorder %s22_s17, 5  }
 0x55b   :  { %21 = sbr.rel (!%p19_p3) target bundleno = 1 (0x1), region = 99 }
 0x562   :  { %862 = vsyncpa [#allocation3], 1 }
 0x563   :  { %864 = vsyncpa [#allocation3 + $0x1], 1 }

</bundles_post_ra>
